<compile_context>
chip_gen: v7x
topology: tpu7x:2x2x1
jax: 0.10.0
libtpu: 0.0.40
codegen_flags: <defaults>
</compile_context>

<pallas_src>
import jax
import jax.numpy as jnp
from jax import lax
from jax.experimental import pallas as pl
from jax.experimental.pallas import tpu as pltpu


_EPS = 1e-5
# Leaves headroom on v7x (64 MiB / TC); well under v5e/v6e's 128 MiB.
_VMEM_LIMIT = 48 * 1024 * 1024
_VMEM_BUDGET = 40 * 1024 * 1024


def _round_up(x, m):
    return (x + m - 1) // m * m


# -----------------------------------------------------------------------------
# Pass 1: conv-as-matmul (Cout x Ptile) + per-channel sum / sum-of-squares.
# -----------------------------------------------------------------------------
def _conv_stats_kernel(patches_ref, w_ref, y_ref, sum_ref, ssq_ref):
    # patches_ref: (1, Kp, PT)      w_ref: (Cp, Kp)      y_ref: (1, Cp, PT)
    # sum_ref / ssq_ref: (1, Cp, 1) f32 accumulators, revisited across the P sweep.
    p_idx = pl.program_id(1)

    @pl.when(p_idx == 0)
    def _():
        sum_ref[...] = jnp.zeros_like(sum_ref)
        ssq_ref[...] = jnp.zeros_like(ssq_ref)

    # Conv as MXU matmul; the large P axis is lane-dense (unmasked vst).
    y = jnp.dot(w_ref[...], patches_ref[0],
                preferred_element_type=jnp.float32)            # (Cp, PT) f32
    y_ref[0] = y.astype(y_ref.dtype)

    # Per-channel stats (cross-lane reduce -> XLU slot), always from the f32
    # accumulator.  Padded P columns are all-zero so they contribute nothing;
    # the wrapper divides by the true P.
    sum_ref[0] += jnp.sum(y, axis=1, keepdims=True)
    ssq_ref[0] += jnp.sum(y * y, axis=1, keepdims=True)
    # TODO(synk): for extremely large P a compensated/Welford-style merge would
    # be more robust than raw f32 sum / sum-of-squares.


# -----------------------------------------------------------------------------
# Pass 2: folded instance-norm affine (one FMA) + LeakyReLU(0.01).
# -----------------------------------------------------------------------------
def _norm_lrelu_kernel(y_ref, scale_ref, shift_ref, o_ref):
    y = y_ref[0].astype(jnp.float32)                 # (Cp, PT)
    out = y * scale_ref[0] + shift_ref[0]            # (Cp, 1) lane-broadcast
    o_ref[0] = jnp.where(out >= 0, out, 0.01 * out).astype(o_ref.dtype)


def _im2col_3d(x, ksize, stride, padding):
    """x: (N, Cin, D, H, W) -> patches (N, K, P); K = Cin*kd*kh*kw, Cin-major
    with kernel taps in (kd, kh, kw) row-major order (matches PyTorch's
    (Cout, Cin, kd, kh, kw) weight flattening)."""
    N, Cin, D, H, W = x.shape
    kd, kh, kw = ksize
    sd, sh, sw = stride
    pd, ph, pw = padding
    Do = (D + 2 * pd - kd) // sd + 1
    Ho = (H + 2 * ph - kh) // sh + 1
    Wo = (W + 2 * pw - kw) // sw + 1
    xp = jnp.pad(x, ((0, 0), (0, 0), (pd, pd), (ph, ph), (pw, pw)))
    taps = []
    for dz in range(kd):
        for dy in range(kh):
            for dx in range(kw):
                taps.append(xp[:, :,
                               dz:dz + sd * Do:sd,
                               dy:dy + sh * Ho:sh,
                               dx:dx + sw * Wo:sw])        # (N, Cin, Do, Ho, Wo)
    patches = jnp.stack(taps, axis=2)                      # (N, Cin, taps, Do, Ho, Wo)
    patches = patches.reshape(N, Cin * kd * kh * kw, Do * Ho * Wo)   # (N, K, P)
    return patches, (Do, Ho, Wo)
    # TODO(synk): build the (K, Ptile) patch tile inside the kernel with manual
    # DMAs from the raw NCDHW tensor (memory_space=pl.ANY + make_async_copy) to
    # remove the kd*kh*kw-fold im2col HBM inflation entirely.


def _pick_p_tile(P, p_tile, Kp, Cp, in_bytes, y_bytes):
    """Largest P tile (multiple of 128) <= p_tile that fits the VMEM budget
    with double-buffered patches + y blocks and the resident weight slab."""
    PT = min(_round_up(P, 128), _round_up(max(p_tile, 128), 128))
    while PT > 128:
        need = (2 * Kp * PT * in_bytes        # patches (double-buffered)
                + 2 * Cp * PT * y_bytes       # y output (double-buffered)
                + Cp * Kp * in_bytes          # resident weights
                + 4 * Cp * 4 * 2)             # sum / ssq accumulators
        if need <= _VMEM_BUDGET:
            break
        PT = max(128, _round_up(PT // 2, 128))
    return PT


def conv_dropout_norm_nonlin(x, weight, bias, gamma, beta, stride, padding,
                             *, compute_dtype=jnp.bfloat16, p_tile=1024):
    """Fused Conv3d -> InstanceNorm3d(affine=True) -> LeakyReLU(0.01).

    x: (N, Cin, D, H, W); weight: (Cout, Cin, kd, kh, kw).
    The conv bias is constant per channel, so InstanceNorm's mean subtraction
    cancels it exactly; it is skipped in-kernel (kept in the signature for
    API parity with the PyTorch module).
    """
    del bias  # mathematically a no-op under InstanceNorm without running stats
    N, Cin = x.shape[:2]
    Cout = weight.shape[0]
    ksize = tuple(weight.shape[2:])

    patches, (Do, Ho, Wo) = _im2col_3d(x, ksize, stride, padding)
    K = Cin * ksize[0] * ksize[1] * ksize[2]
    P = Do * Ho * Wo

    # TPU-friendly padding: K -> multiple of 128 (unmasked W loads / full
    # sublane tiles of patches), Cout -> multiple of 8, P -> multiple of tile.
    Kp = _round_up(K, 128)
    Cp = _round_up(Cout, 8)
    in_bytes = jnp.dtype(compute_dtype).itemsize
    PT = _pick_p_tile(P, p_tile, Kp, Cp, in_bytes, in_bytes)
    Pp = _round_up(P, PT)
    n_pt = Pp // PT

    patches = jnp.pad(patches, ((0, 0), (0, Kp - K), (0, Pp - P)))
    patches = patches.astype(compute_dtype)
    w_mat = jnp.pad(weight.reshape(Cout, K).astype(jnp.float32),
                    ((0, Cp - Cout), (0, Kp - K))).astype(compute_dtype)

    # ---- Pass 1: conv + per-channel stats ----------------------------------
    y_conv, s_out, ss_out = pl.pallas_call(
        _conv_stats_kernel,
        out_shape=(jax.ShapeDtypeStruct((N, Cp, Pp), compute_dtype),
                   jax.ShapeDtypeStruct((N, Cp, 1), jnp.float32),
                   jax.ShapeDtypeStruct((N, Cp, 1), jnp.float32)),
        grid_spec=pltpu.PrefetchScalarGridSpec(
            num_scalar_prefetch=0,
            grid=(N, n_pt),
            in_specs=[
                pl.BlockSpec((1, Kp, PT), lambda n, p: (n, 0, p)),
                pl.BlockSpec((Cp, Kp), lambda n, p: (0, 0)),   # resident weights
            ],
            out_specs=[
                pl.BlockSpec((1, Cp, PT), lambda n, p: (n, 0, p)),
                pl.BlockSpec((1, Cp, 1), lambda n, p: (n, 0, 0)),
                pl.BlockSpec((1, Cp, 1), lambda n, p: (n, 0, 0)),
            ],
        ),
        compiler_params=pltpu.CompilerParams(
            dimension_semantics=("parallel", "arbitrary"),
            vmem_limit_bytes=_VMEM_LIMIT),
    )(patches, w_mat)

    # ---- Tiny O(N*C) epilogue math in plain JAX ----------------------------
    inv_p = jnp.float32(1.0 / P)
    mean = s_out[..., 0] * inv_p                                   # (N, Cp)
    var = jnp.maximum(ss_out[..., 0] * inv_p - mean * mean, 0.0)   # (N, Cp)
    g = jnp.pad(gamma.astype(jnp.float32), (0, Cp - Cout), constant_values=1.0)
    bt = jnp.pad(beta.astype(jnp.float32), (0, Cp - Cout))
    scale = g[None, :] * lax.rsqrt(var + _EPS)                     # (N, Cp)
    shift = bt[None, :] - mean * scale

    # ---- Pass 2: normalize + affine + LeakyReLU ----------------------------
    out = pl.pallas_call(
        _norm_lrelu_kernel,
        out_shape=jax.ShapeDtypeStruct((N, Cp, Pp), jnp.float32),
        grid_spec=pltpu.PrefetchScalarGridSpec(
            num_scalar_prefetch=0,
            grid=(N, n_pt),
            in_specs=[
                pl.BlockSpec((1, Cp, PT), lambda n, p: (n, 0, p)),
                pl.BlockSpec((1, Cp, 1), lambda n, p: (n, 0, 0)),
                pl.BlockSpec((1, Cp, 1), lambda n, p: (n, 0, 0)),
            ],
            out_specs=pl.BlockSpec((1, Cp, PT), lambda n, p: (n, 0, p)),
        ),
        compiler_params=pltpu.CompilerParams(
            dimension_semantics=("parallel", "parallel"),
            vmem_limit_bytes=_VMEM_LIMIT),
    )(y_conv, scale[..., None], shift[..., None])

    # Output is already channel-major over the flattened spatial axis.
    return out[:, :Cout, :P].reshape(N, Cout, Do, Ho, Wo)


def _reference(x, weight, bias, gamma, beta, stride, padding):
    y = lax.conv_general_dilated(
        x, weight, window_strides=stride,
        padding=[(p, p) for p in padding],
        dimension_numbers=("NCDHW", "OIDHW", "NCDHW"))
    y = y + bias.reshape(1, -1, 1, 1, 1)
    mean = jnp.mean(y, axis=(2, 3, 4), keepdims=True)
    var = jnp.mean((y - mean) ** 2, axis=(2, 3, 4), keepdims=True)
    y = (y - mean) * lax.rsqrt(var + _EPS)
    y = y * gamma.reshape(1, -1, 1, 1, 1) + beta.reshape(1, -1, 1, 1, 1)
    return jnp.where(y >= 0, y, 0.01 * y)


if __name__ == "__main__":
    key = jax.random.PRNGKey(0)
    k_x, k_w, k_b, k_g, k_be = jax.random.split(key, 5)

    N, Cin, Cout = 2, 4, 8
    D = H = W = 8
    ksize = (3, 3, 3)
    stride = (1, 1, 1)
    padding = (1, 1, 1)

    x = jax.random.normal(k_x, (N, Cin, D, H, W), dtype=jnp.float32)
    weight = 0.1 * jax.random.normal(k_w, (Cout, Cin) + ksize, dtype=jnp.float32)
    bias = 0.1 * jax.random.normal(k_b, (Cout,), dtype=jnp.float32)
    gamma = 1.0 + 0.1 * jax.random.normal(k_g, (Cout,), dtype=jnp.float32)
    beta = 0.1 * jax.random.normal(k_be, (Cout,), dtype=jnp.float32)

    ref = jax.block_until_ready(
        _reference(x, weight, bias, gamma, beta, stride, padding))

    # f32 path with a forced multi-tile P sweep (P=512 -> 4 tiles of 128;
    # exercises the stats accumulation across grid steps) -> tight tolerance.
    out_f32 = jax.block_until_ready(conv_dropout_norm_nonlin(
        x, weight, bias, gamma, beta, stride, padding,
        compute_dtype=jnp.float32, p_tile=128))
    assert out_f32.shape == (N, Cout, D, H, W), out_f32.shape
    assert jnp.allclose(out_f32, ref, atol=1e-3, rtol=1e-3), float(
        jnp.max(jnp.abs(out_f32 - ref)))

    # Default bf16 fast path (halves the im2col + intermediate HBM streams,
    # native MXU bf16, f32 accumulate) -> bf16-appropriate tolerance.
    out_bf16 = jax.block_until_ready(conv_dropout_norm_nonlin(
        x, weight, bias, gamma, beta, stride, padding))
    assert out_bf16.shape == (N, Cout, D, H, W), out_bf16.shape
    assert jnp.allclose(out_bf16, ref, atol=5e-2, rtol=5e-2), float(
        jnp.max(jnp.abs(out_bf16 - ref)))

    print("KERNEL_OK")
</pallas_src>

<mosaic_0001>
module attributes {stable_mosaic.version = 11 : i64} {
  func.func @_conv_stats_kernel(%arg0: i32, %arg1: i32, %arg2: memref<1x128x128xf32, #tpu.memory_space<vmem>>, %arg3: memref<8x128xf32, #tpu.memory_space<vmem>>, %arg4: memref<1x8x128xf32, #tpu.memory_space<vmem>>, %arg5: memref<1x8x1xf32, #tpu.memory_space<vmem>>, %arg6: memref<1x8x1xf32, #tpu.memory_space<vmem>>) attributes {dimension_semantics = [#tpu.dimension_semantics<parallel>, #tpu.dimension_semantics<arbitrary>], iteration_bounds = array<i64: 2, 4>, scalar_prefetch = 0 : i64, scratch_operands = 0 : i64, tpu.core_type = #tpu.core_type<tc>, window_params = [{transform_indices = @transform_0, window_bounds = array<i64: 1, 128, 128>}, {pipeline_mode = #tpu.pipeline_mode<synchronous>, transform_indices = @transform_1, window_bounds = array<i64: 8, 128>}, {transform_indices = @transform_2, window_bounds = array<i64: 1, 8, 128>}, {transform_indices = @transform_3, window_bounds = array<i64: 1, 8, 1>}, {transform_indices = @transform_4, window_bounds = array<i64: 1, 8, 1>}]} {
    %c0_i32 = arith.constant 0 : i32
    %0 = arith.cmpi eq, %arg1, %c0_i32 : i32
    %1 = arith.extui %0 : i1 to i32
    %c0_i32_0 = arith.constant 0 : i32
    %2 = arith.cmpi ne, %1, %c0_i32_0 : i32
    scf.if %2 {
      %cst_22 = arith.constant 0.000000e+00 : f32
      %27 = vector.broadcast %cst_22 : f32 to vector<1x8x1xf32>
      %c0_23 = arith.constant 0 : index
      %c0_24 = arith.constant 0 : index
      %c0_25 = arith.constant 0 : index
      %28 = vector.load %arg5[%c0_23, %c0_24, %c0_25] : memref<1x8x1xf32, #tpu.memory_space<vmem>>, vector<1x8x1xf32>
      tpu.vector_store %arg5[%c0_23, %c0_24, %c0_25], %27 {strides = array<i32>} : memref<1x8x1xf32, #tpu.memory_space<vmem>>, vector<1x8x1xf32>,
      %cst_26 = arith.constant 0.000000e+00 : f32
      %29 = vector.broadcast %cst_26 : f32 to vector<1x8x1xf32>
      %c0_27 = arith.constant 0 : index
      %c0_28 = arith.constant 0 : index
      %c0_29 = arith.constant 0 : index
      %30 = vector.load %arg6[%c0_27, %c0_28, %c0_29] : memref<1x8x1xf32, #tpu.memory_space<vmem>>, vector<1x8x1xf32>
      tpu.vector_store %arg6[%c0_27, %c0_28, %c0_29], %29 {strides = array<i32>} : memref<1x8x1xf32, #tpu.memory_space<vmem>>, vector<1x8x1xf32>,
    } else {
    }
    %c0 = arith.constant 0 : index
    %c0_1 = arith.constant 0 : index
    %3 = vector.load %arg3[%c0, %c0_1] : memref<8x128xf32, #tpu.memory_space<vmem>>, vector<8x128xf32>
    %c0_2 = arith.constant 0 : index
    %c0_3 = arith.constant 0 : index
    %c0_4 = arith.constant 0 : index
    %4 = vector.load %arg2[%c0_2, %c0_3, %c0_4] : memref<1x128x128xf32, #tpu.memory_space<vmem>>, vector<1x128x128xf32>
    %5 = vector.shape_cast %4 : vector<1x128x128xf32> to vector<128x128xf32>
    %cst = arith.constant dense<0.000000e+00> : vector<8x128xf32>
    %6 = tpu.matmul %3, %5, %cst {dimension_numbers = #tpu.dot_dimension_numbers<[1], [0], [0], [1], [0, 0, 1, 1], [], []>} : vector<8x128xf32>, vector<128x128xf32>, vector<8x128xf32> -> vector<8x128xf32>
    %c0_5 = arith.constant 0 : index
    %c0_6 = arith.constant 0 : index
    %c0_7 = arith.constant 0 : index
    %7 = vector.load %arg4[%c0_5, %c0_6, %c0_7] : memref<1x8x128xf32, #tpu.memory_space<vmem>>, vector<1x8x128xf32>
    %8 = vector.shape_cast %7 : vector<1x8x128xf32> to vector<8x128xf32>
    %9 = vector.shape_cast %6 : vector<8x128xf32> to vector<1x8x128xf32>
    tpu.vector_store %arg4[%c0_5, %c0_6, %c0_7], %9 {strides = array<i32>} : memref<1x8x128xf32, #tpu.memory_space<vmem>>, vector<1x8x128xf32>,
    %c0_8 = arith.constant 0 : index
    %c0_9 = arith.constant 0 : index
    %c0_10 = arith.constant 0 : index
    %10 = vector.load %arg5[%c0_8, %c0_9, %c0_10] : memref<1x8x1xf32, #tpu.memory_space<vmem>>, vector<1x8x1xf32>
    %11 = vector.shape_cast %10 : vector<1x8x1xf32> to vector<8x1xf32>
    %cst_11 = arith.constant dense<0.000000e+00> : vector<8xf32>
    %12 = vector.multi_reduction <add>, %6, %cst_11 [1] : vector<8x128xf32> to vector<8xf32>
    %13 = vector.shape_cast %12 : vector<8xf32> to vector<8x1xf32>
    %14 = arith.addf %11, %13 : vector<8x1xf32>
    %c0_12 = arith.constant 0 : index
    %c0_13 = arith.constant 0 : index
    %c0_14 = arith.constant 0 : index
    %15 = vector.load %arg5[%c0_12, %c0_13, %c0_14] : memref<1x8x1xf32, #tpu.memory_space<vmem>>, vector<1x8x1xf32>
    %16 = vector.shape_cast %15 : vector<1x8x1xf32> to vector<8x1xf32>
    %17 = vector.shape_cast %14 : vector<8x1xf32> to vector<1x8x1xf32>
    tpu.vector_store %arg5[%c0_12, %c0_13, %c0_14], %17 {strides = array<i32>} : memref<1x8x1xf32, #tpu.memory_space<vmem>>, vector<1x8x1xf32>,
    %c0_15 = arith.constant 0 : index
    %c0_16 = arith.constant 0 : index
    %c0_17 = arith.constant 0 : index
    %18 = vector.load %arg6[%c0_15, %c0_16, %c0_17] : memref<1x8x1xf32, #tpu.memory_space<vmem>>, vector<1x8x1xf32>
    %19 = vector.shape_cast %18 : vector<1x8x1xf32> to vector<8x1xf32>
    %20 = arith.mulf %6, %6 : vector<8x128xf32>
    %cst_18 = arith.constant dense<0.000000e+00> : vector<8xf32>
    %21 = vector.multi_reduction <add>, %20, %cst_18 [1] : vector<8x128xf32> to vector<8xf32>
    %22 = vector.shape_cast %21 : vector<8xf32> to vector<8x1xf32>
    %23 = arith.addf %19, %22 : vector<8x1xf32>
    %c0_19 = arith.constant 0 : index
    %c0_20 = arith.constant 0 : index
    %c0_21 = arith.constant 0 : index
    %24 = vector.load %arg6[%c0_19, %c0_20, %c0_21] : memref<1x8x1xf32, #tpu.memory_space<vmem>>, vector<1x8x1xf32>
    %25 = vector.shape_cast %24 : vector<1x8x1xf32> to vector<8x1xf32>
    %26 = vector.shape_cast %23 : vector<8x1xf32> to vector<1x8x1xf32>
    tpu.vector_store %arg6[%c0_19, %c0_20, %c0_21], %26 {strides = array<i32>} : memref<1x8x1xf32, #tpu.memory_space<vmem>>, vector<1x8x1xf32>,
    return
  }
  func.func @transform_0(%arg0: i32, %arg1: i32) -> (i32, i32, i32) {
    %c0_i32 = arith.constant 0 : i32
    %c0_i32_0 = arith.constant 0 : i32
    return %arg0, %c0_i32, %arg1 : i32, i32, i32
  }
  func.func @transform_1(%arg0: i32, %arg1: i32) -> (i32, i32) {
    %c0_i32 = arith.constant 0 : i32
    %c0_i32_0 = arith.constant 0 : i32
    %c0_i32_1 = arith.constant 0 : i32
    return %c0_i32, %c0_i32_0 : i32, i32
  }
  func.func @transform_2(%arg0: i32, %arg1: i32) -> (i32, i32, i32) {
    %c0_i32 = arith.constant 0 : i32
    %c0_i32_0 = arith.constant 0 : i32
    return %arg0, %c0_i32, %arg1 : i32, i32, i32
  }
  func.func @transform_3(%arg0: i32, %arg1: i32) -> (i32, i32, i32) {
    %c0_i32 = arith.constant 0 : i32
    %c0_i32_0 = arith.constant 0 : i32
    %c0_i32_1 = arith.constant 0 : i32
    return %arg0, %c0_i32, %c0_i32_0 : i32, i32, i32
  }
  func.func @transform_4(%arg0: i32, %arg1: i32) -> (i32, i32, i32) {
    %c0_i32 = arith.constant 0 : i32
    %c0_i32_0 = arith.constant 0 : i32
    %c0_i32_1 = arith.constant 0 : i32
    return %arg0, %c0_i32, %c0_i32_0 : i32, i32, i32
  }
}

</mosaic_0001>

<bundles_post_ra>
// kernel: tpu_custom_call.1
= control target key start
LH: loop header
LB: loop body
LE: loop exit
PB: predicated region body
PF: predicated region fallthrough
CT: control target
= control target key end

     0   :  { %s1207_s0 = inlined_call_operand.hbm [shape: f32[2,128,512], index: 0, kind: input, shape index: {}]   ;;  %s1208_s1 = inlined_call_operand.hbm [shape: f32[8,128], index: 1, kind: input, shape index: {}]   ;;  %s1209_s2 = inlined_call_operand.hbm [shape: f32[2,8,512], index: 2, kind: output, shape index: {0}]   ;;  %s1210_s3 = inlined_call_operand.vmem [shape: f32[2,8,1], index: 3, kind: output, shape index: {1}]   ;;  %s1211_s4 = inlined_call_operand.vmem [shape: f32[2,8,1], index: 4, kind: output, shape index: {2}]  }
   0x1   :  { %1221 = sst [smem:[#allocation14_spill]] %s1208_s1 }
   0x2   :  { %10 = vsyncpa [#allocation3], 0 }
   0x3   :  { %12 = vsyncpa [#allocation3 + $0x1], 0 }
   0x4   :  { %13 = vsyncpa [#allocation6], 0 }
   0x5   :  { %14 = vsyncpa [#allocation4], 0 }
   0x6   :  { %16 = vsyncpa [#allocation4 + $0x1], 0  ;;  %s936_s15 = smov 0   ;;  %s938_s16 = smov 0  }
   0x7   :  { %s940_s17 = smov 0   ;;  %s942_s18 = smov 0  }
   0x8   :  { %s944_s19 = smov 0   ;;  %s946_s20 = smov 0  }
   0x9   :  { %s948_s21 = smov 0   ;;  %s950_s22 = smov 0  }
   0xa LB: > { %1222 = sst [smem:[#allocation11_spill]] %s891_s20  ;;  %s547_s23 = sadd.s32 4294967295, %s899_s22   ;;  %s899_s22 = sphi %s950_s22, %s22_s22   ;;  %s895_s21 = sphi %s948_s21, %s1249_s21   ;;  %s891_s20 = sphi %s946_s20, %s1248_s20   ;;  %s887_s19 = sphi %s944_s19, %s1247_s19   ;;  %s883_s18 = sphi %s942_s18, %s1242_s18   ;;  %s879_s17 = sphi %s940_s17, %s1246_s17   ;;  %s875_s16 = sphi %s938_s16, %s1245_s16   ;;  %s871_s15 = sphi %s936_s15, %s1244_s15  }
   0xb   : > { %s548_s24 = sadd.s32 4294967294, %s899_s22   ;;  %p50_p0 = scmp.ne.s32.totalorder %s879_s17, %s875_s16 }
   0xc   : > { %p51_p1 = scmp.eq.s32.totalorder %s899_s22, 0  ;;  %p56_p2 = scmp.ne.s32.totalorder %s875_s16, %s871_s15 }
   0xd   : > { %p984_p3 = scmp.eq.s32.totalorder %s547_s23, 0  ;;  %p103_p4 = scmp.eq.s32.totalorder %s547_s23, 7 }
   0xe   : > { %p988_p5 = por %p51_p1, %p50_p0  ;;  %p109_p6 = scmp.eq.s32.totalorder %s548_s24, 7 }
   0xf   : > { %s1223_s26 = scalar_select %p984_p3, 1, 0 }
  0x10   : > { %p994_p7 = por %p984_p3, %p56_p2  ;;  %p998_p8 = por %p103_p4, %p50_p0 }
  0x11   : > { %p1002_p9 = por %p109_p6, %p56_p2  ;;  %p549_p10 = scmp.ge.s32.totalorder %s899_s22, 1 }
  0x12   : > { %s1225_s28 = scalar_select %p994_p7, 1, 0 }
  0x13   : > { %s1226_s29 = scalar_select %p998_p8, 1, 0 }
  0x14   : > { %s1227_s30 = scalar_select %p1002_p9, 1, 0 }
  0x15   : > { %p168_p11 = scmp.lt.s32.totalorder %s899_s22, 9  ;;  %s901_s6 = smov [#allocation5]  }
  0x16   : > { %1228 = sst [smem:[#allocation12_spill]] %s1227_s30  ;;  %s181_s7 = sshll.u32 %s901_s6, 4  ;;  %s182_s7 = int_to_ptr.vmem [resolvable:$true] %s181_s7 }
  0x17   : > { %p1008_p12 = pnand %p549_p10, %p168_p11  ;;  %p664_p13 = scmp.lt.s32.totalorder %s899_s22, 8 }
  0x18   : > { %s31_s10 = sadd.s32 1, %s891_s20  ;;  %s1232_s1 = sld [smem:[#allocation14_spill]] }
  0x19   : > { %s1229_s5 = scalar_select %p1008_p12, 1, 0 }
  0x1a   : > { %p651_p0 = pneg %p1008_p12  ;;  %p1017_p1 = pnand %p664_p13, %p988_p5 }
  0x1c   : > { %s1230_s8 = scalar_select %p1017_p1, 1, 0 }
  0x1d   : > { %p1023_p2 = pnand %p651_p0, %p984_p3 }
  0x1e   : > { %s739_s13 = scalar_lea.hbm %s1232_s1, 128 }
  0x1f   : > { %p740_p4 = scmp.ne.s32.totalorder %s1232_s1, %s739_s13  ;;  %p741_p5 = pneg %p1023_p2 }
  0x20   : > { %p746_p11 = scmp.lt.u32.totalorder %s739_s13, %s1232_s1 }
  0x21   : > { %p742_p6 = pnand %p741_p5, %p740_p4 }
  0x23   : > { %p743_p10 = pneg %p742_p6 }
  0x25   : > { %p748_p13 = pnand %p746_p11, %p743_p10 }
  0x27   : > { %751 = shalt.err (!%p748_p13)
}
  0x28   : > { %s752_s6 = scalar_lea.vmem %s182_s7, 128  ;;  %p760_p3 = scmp.lt.s32.totalorder %s182_s7, %s182_s7 }
  0x29   : > { %p753_p0 = scmp.ne.s32.totalorder %s182_s7, %s752_s6  ;;  %p761_p7 = scmp.lt.s32.totalorder %s752_s6, %s752_s6 }
  0x2b   : > { %p755_p9 = pnand %p753_p0, %p741_p5  ;;  %p762_p12 = por %p761_p7, %p760_p3 }
  0x2d   : > { %p756_p8 = pneg %p755_p9 }
  0x2f   : > { %p763_p1 = pnand %p762_p12, %p756_p8 }
  0x31   : > { %766 = shalt.err (!%p763_p1)
}
  0x32   : > { %654 = dma.hbm_to_vmem [thread:$0]  (!%p1023_p2), %s1232_s1, 128, %s182_s7, [#allocation6]  }
  0x33   : > { %p32_p4 = scmp.ge.s32.totalorder %s31_s10, 4  ;;  %s34_s13 = sadd.s32 1, %s895_s21 }
  0x34   : > { %s192_s14 = sand.u32 1, %s879_s17   ;;  %s553_s23 = sshll.u32 %s895_s21, 6 }
  0x35   : > { %s1251_s10 = smov (%p32_p4, %s31_s10), 0  ;;  %s1253_s13 = smov (!%p32_p4, %s34_s13), %s895_s21 }
  0x36   : > { %1233 = sst [smem:[#allocation13_spill]] %s1251_s10  ;;  %s39_s9 = ssub.s32 %s891_s20, %s1251_s10 }
  0x37   : > { %p36_p3 = scmp.ge.s32.totalorder %s1253_s13, 2  ;;  %s552_s24 = sshll.u32 %s192_s14, 7 }
  0x38   : > { %s201_s27 = sadd.s32 %s891_s20, %s553_s23  ;;  %s196_s6 = scalar_lea.vmem [#allocation2], %s552_s24 }
  0x39   : > { %s1255_s13 = smov (%p36_p3, %s1253_s13), 0  ;;  %s554_s7 = sshll.u32 %s201_s27, 7 }
  0x3a   : > { %s204_s11 = sshll.u32 %s196_s6, 4  ;;  %s38_s12 = ssub.s32 %s895_s21, %s1255_s13  ;;  %s1062_s11 = int_to_ptr.vmem [resolvable:$true] %s204_s11 }
  0x3b   : > { %s1060_s30 = scalar_lea.hbm %s1207_s0, %s554_s7  ;;  %s40_s10 = sor.u32 %s39_s9, %s38_s12 }
  0x3c   : > { %p41_p7 = scmp.eq.s32.totalorder %s40_s10, 0  ;;  %s1234_s23 = sadd.s32 1, %s879_s17 }
  0x3d   : > { %s1069_s27 = scalar_lea.sflag [#allocation3], %s192_s14  ;;  %s767_s24 = scalar_lea.hbm %s1060_s30, 2048 }
  0x3e   : > { %s1067_s20 = scalar_select %p41_p7, %s879_s17, %s1234_s23  }
  0x3f   : > { %p768_p8 = scmp.ne.s32.totalorder %s1060_s30, %s767_s24  ;;  %p1235_p9 = scmp.ne.s32.totalorder %s1230_s8, 0 }
  0x40   : > { %s772_s9 = scalar_lea.hbm %s1207_s0, 16384  ;;  %p773_p5 = scmp.lt.u32.totalorder %s1060_s30, %s1207_s0 }
  0x41   : > { %p769_p12 = pneg %p1235_p9  ;;  %p774_p6 = scmp.lt.u32.totalorder %s772_s9, %s767_s24 }
  0x42   : > { %p776_p11 = scmp.lt.u32.totalorder %s767_s24, %s1060_s30 }
  0x43   : > { %p770_p1 = pnand %p769_p12, %p768_p8  ;;  %p775_p10 = por %p774_p6, %p773_p5 }
  0x45   : > { %p771_p2 = pneg %p770_p1  ;;  %p777_p13 = por %p776_p11, %p775_p10 }
  0x47   : > { %p778_p0 = pnand %p777_p13, %p771_p2 }
  0x49   : > { %781 = shalt.err (!%p778_p0)
}
  0x4a   : > { %s782_s10 = scalar_lea.vmem %s1062_s11, 2048  ;;  %s902_s14 = smov [#allocation2]  }
  0x4b   : > { %p783_p4 = scmp.ne.s32.totalorder %s1062_s11, %s782_s10  ;;  %s787_s12 = sshll.u32 %s902_s14, 4  ;;  %s788_s12 = int_to_ptr.vmem [resolvable:$false] %s787_s12 }
  0x4c   : > { %s789_s23 = scalar_lea.vmem %s788_s12, 4096  ;;  %p790_p8 = scmp.lt.s32.totalorder %s1062_s11, %s788_s12 }
  0x4d   : > { %p785_p3 = pnand %p783_p4, %p769_p12  ;;  %p791_p1 = scmp.lt.s32.totalorder %s789_s23, %s782_s10 }
  0x4f   : > { %p786_p7 = pneg %p785_p3  ;;  %p792_p5 = por %p791_p1, %p790_p8 }
  0x51   : > { %p793_p6 = pnand %p792_p5, %p786_p7 }
  0x53   : > { %796 = shalt.err (!%p793_p6)
}
  0x54   : > { %s903_s24 = smov 512   ;;  %s904_s1 = smov 128  }
  0x55   : > { %s905_s25 = smov 8   ;;  %p1236_p12 = scmp.ne.s32.totalorder %s1229_s5, 0 }
  0x56   : > { %658 = dma.hbm_to_vmem [thread:$0]  (!%p1235_p9), %s1060_s30, 2048, %s1062_s11, %s1069_s27, %s903_s24, %s904_s1, %s905_s25  }
  0x57   : > { %216 = sbr.rel (%p1236_p12) target bundleno = 503 (0x1f7), region = 28  ;;  %s1100_s9 = sand.u32 (!%p1236_p12), 1, %s875_s16  }
  0x58   : > { %s556_s7 = sshll.u32 (!%p1236_p12), %s1100_s9, 7  ;;  %s219_s6 = scalar_lea.sflag (!%p1236_p12), [#allocation3], %s1100_s9 }
  0x59   : > { %s1104_s10 = scalar_lea.vmem (!%p1236_p12), [#allocation2], %s556_s7  ;;  %p1237_p2 = scmp.ne.s32.totalorder (!%p1236_p12), %s1225_s28, 0 }
  0x5e   : > { %858 = dma.done.wait (%p1237_p2), %s219_s6, 2048  }
  0x5f   : > { %860 = vsyncadd (%p1237_p2), %s219_s6, 4294965248  ;;  %p1238_p9 = scmp.ne.s32.totalorder %s1223_s26, 0 }
  0x61   : > { %862 = dma.done.wait (%p1238_p9), [#allocation6], 128  }
  0x62   : > { %864 = vsyncadd (%p1238_p9), [#allocation6], 4294967168  ;;  %s558_s30 = sshll.u32 %s1100_s9, 3  ;;  %p259_p10 = scmp.lt.s32.totalorder %s887_s19, 1 }
  0x63   : > { %s1127_s24 = scalar_lea.vmem [#allocation7], %s558_s30  ;;  %p561_p11 = scmp.ne.s32.totalorder %s883_s18, 0 }
  0x64   : > { %s260_s5 = scalar_select %p259_p10, %s887_s19, 1 }
  0x65   : > { %270 = sbr.rel (%p561_p11) target bundleno = 108 (0x6c), region = 40  ;;  %vm271_vm0 = vcmask (!%p561_p11), 7168   ;;  %v906_v0 = vmov (!%p561_p11), 0.0  }
  0x66   : > { %s559_s8 = sshll.u32 %s260_s5, 3 }
  0x67   : > { %s1120_s14 = scalar_lea.vmem %s1210_s3, %s559_s8  ;;  %s1125_s23 = scalar_lea.vmem %s1211_s4, %s559_s8 }
  0x68   : > { %272 = vst.msk [vmem:[%s1120_s14] sm:$0xff] (!%p561_p11), %vm271_vm0, %v906_v0  ;;  %273 = vst.msk [vmem:[%s1125_s23] sm:$0xff] (!%p561_p11), %vm271_vm0, %v906_v0 }
  0x6c PF: > { %v275_v1 = vld [vmem:[%s1104_s10] sm:$0xff]  ;;  %v276_v2 = vld [vmem:[%s1104_s10 + $0x8] sm:$0xff]  ;;  %v277_v3 = vld [vmem:[%s1104_s10 + $0x10] sm:$0xff]  ;;  %v907_v4 = vmov 0.0|0.0   ;;  %vm908_vm1 = vmmov 0   ;;  %v909_v7 = vmov 0.0  }
  0x6d   : > { %619 = vmatprep.subr.bf16.mxu0 %v907_v4  ;;  %v620_v5 = vpack.c.bf16 %v276_v2, %v275_v1  ;;  %v278_v6 = vld [vmem:[%s1104_s10 + $0x18] sm:$0xff]  ;;  %616 = vmatprep.mubr.msk.f32.mxu0 %vm908_vm1, %v909_v7  ;;  %v279_v9 = vld [vmem:[%s1104_s10 + $0x20] sm:$0xff]  ;;  %v280_v10 = vld [vmem:[%s1104_s10 + $0x28] sm:$0xff]  ;;  %s563_s26 = sshll.u32 %s887_s19, 2  ;;  %s398_s7 = sshll.u32 %s1127_s24, 4  ;;  %s399_s7 = int_to_ptr.vmem [resolvable:$true] %s398_s7 }
  0x6e   : > { %v623_v8 = vpack.c.bf16 %v278_v6, %v277_v3  ;;  %v626_v11 = vpack.c.bf16 %v280_v10, %v279_v9  ;;  %v281_v12 = vld [vmem:[%s1104_s10 + $0x30] sm:$0xff]  ;;  %v282_v13 = vld [vmem:[%s1104_s10 + $0x38] sm:$0xff]  ;;  %v283_v15 = vld [vmem:[%s1104_s10 + $0x40] sm:$0xff]  ;;  %s394_s1 = sadd.s32 %s883_s18, %s563_s26  ;;  %s375_s5 = scalar_lea.sflag [#allocation4], %s1100_s9 }
  0x6f   : > { %621 = vmatpush3.bf16.msra.mxu0 %v620_v5  ;;  %v629_v14 = vpack.c.bf16 %v282_v13, %v281_v12  ;;  %v284_v16 = vld [vmem:[%s1104_s10 + $0x48] sm:$0xff]  ;;  %v285_v18 = vld [vmem:[%s1104_s10 + $0x50] sm:$0xff]  ;;  %v286_v19 = vld [vmem:[%s1104_s10 + $0x58] sm:$0xff]  ;;  %s564_s25 = sshll.u32 %s394_s1, 7  ;;  %s797_s8 = scalar_lea.vmem %s399_s7, 128 }
  0x70   : > { %622 = vmatprep.subr.bf16.mxu0 %v907_v4  ;;  %v632_v17 = vpack.c.bf16 %v284_v16, %v283_v15  ;;  %v635_v20 = vpack.c.bf16 %v286_v19, %v285_v18  ;;  %v287_v21 = vld [vmem:[%s1104_s10 + $0x60] sm:$0xff]  ;;  %v288_v22 = vld [vmem:[%s1104_s10 + $0x68] sm:$0xff]  ;;  %v289_v24 = vld [vmem:[%s1104_s10 + $0x70] sm:$0xff]  ;;  %s1155_s30 = scalar_lea.hbm %s1209_s2, %s564_s25  ;;  %p798_p13 = scmp.ne.s32.totalorder %s399_s7, %s797_s8 }
  0x71   : > { %v638_v23 = vpack.c.bf16 %v288_v22, %v287_v21  ;;  %v290_v25 = vld [vmem:[%s1104_s10 + $0x78] sm:$0xff]  ;;  %v274_v27 = vld [vmem:[#allocation5] sm:$0xff]  ;;  %p1239_p0 = scmp.ne.s32.totalorder %s1226_s29, 0  ;;  %s910_s11 = smov [#allocation7]  }
  0x72   : > { %v641_v26 = vpack.c.bf16 %v290_v25, %v289_v24  ;;  %s801_s27 = sshll.u32 %s910_s11, 4  ;;  %s802_s27 = int_to_ptr.vmem [resolvable:$false] %s801_s27 }
  0x73   : > { %624 = vmatpush3.bf16.msra.mxu0 %v623_v8  ;;  %p799_p4 = pnand %p798_p13, %p1239_p0  ;;  %s803_s28 = scalar_lea.vmem %s802_s27, 256 }
  0x74   : > { %625 = vmatprep.subr.bf16.mxu0 %v907_v4  ;;  %p804_p7 = scmp.lt.s32.totalorder %s399_s7, %s802_s27  ;;  %p805_p8 = scmp.lt.s32.totalorder %s803_s28, %s797_s8 }
  0x75   : > { %p800_p3 = pneg %p799_p4 }
  0x76   : > { %p806_p1 = por %p805_p8, %p804_p7 }
  0x77   : > { %627 = vmatpush3.bf16.msra.mxu0 %v626_v11 }
  0x78   : > { %628 = vmatprep.subr.bf16.mxu0 %v907_v4  ;;  %p807_p5 = pnand %p806_p1, %p800_p3 }
  0x7b   : > { %630 = vmatpush3.bf16.msra.mxu0 %v629_v14 }
  0x7c   : > { %631 = vmatprep.subr.bf16.mxu0 %v907_v4 }
  0x7f   : > { %633 = vmatpush3.bf16.msra.mxu0 %v632_v17 }
  0x80   : > { %634 = vmatprep.subr.bf16.mxu0 %v907_v4 }
  0x83   : > { %636 = vmatpush3.bf16.msra.mxu0 %v635_v20 }
  0x84   : > { %637 = vmatprep.subr.bf16.mxu0 %v907_v4 }
  0x87   : > { %639 = vmatpush3.bf16.msra.mxu0 %v638_v23 }
  0x88   : > { %640 = vmatprep.subr.bf16.mxu0 %v907_v4 }
  0x8b   : > { %642 = vmatpush3.bf16.msra.mxu0 %v641_v26 }
  0x8e   : > { %617 = vmatmul.mubr.f32.vlgmr.msra.gmra.mrb[0].mxu0 %v274_v27 }
 0x161   : > { %v357_v28 = vpop.f32.mrb[0].mxu0 }
 0x162   : > { %361 = vst [vmem:[%s1127_s24] sm:$0xff] %v357_v28  ;;  %363 = vadd.xlane.f32.xlu0 %v357_v28  ;;  %v618_v29 = vpop.f32.mrb[1].mxu0  ;;  %v369_v30 = vmul.f32 %v357_v28, %v357_v28 }
 0x166   : > { %370 = vadd.xlane.f32.xlu0 %v369_v30 }
 0x167   : > { %810 = shalt.err (!%p807_p5)
}
 0x168   : > { %s811_s18 = scalar_lea.hbm %s1155_s30, 128  ;;  %s815_s12 = scalar_lea.hbm %s1209_s2, 1024 }
 0x169   : > { %p812_p6 = scmp.ne.s32.totalorder %s1155_s30, %s811_s18  ;;  %p816_p9 = scmp.lt.u32.totalorder %s1155_s30, %s1209_s2 }
 0x16a   : > { %p817_p10 = scmp.lt.u32.totalorder %s815_s12, %s811_s18  ;;  %p819_p13 = scmp.lt.u32.totalorder %s811_s18, %s1155_s30 }
 0x16b   : > { %p813_p12 = pnand %p812_p6, %p1239_p0 }
 0x16c   : > { %p818_p11 = por %p817_p10, %p816_p9 }
 0x16d   : > { %p814_p2 = pneg %p813_p12 }
 0x16e   : > { %p820_p4 = por %p819_p13, %p818_p11 }
 0x170   : > { %p821_p3 = pnand %p820_p4, %p814_p2 }
 0x172   : > { %824 = shalt.err (!%p821_p3)
}
 0x173   : > { %649 = dma.vmem_to_hbm [thread:$0]  (%p1239_p0), %s399_s7, 128, %s1155_s30, %s375_s5   ;;  %v362_v31 = vld [vmem:[%s1120_s14] sm:$0xff]  ;;  %vm366_vm2 = vcmask 7168  }
 0x174   : > { %v368_v34 = vld [vmem:[%s1125_s23] sm:$0xff] }
 0x1ef   : > { %v364_v32 = vpop.xlane.xlu0 %363 }
 0x1f0   : > { %v365_v33 = vadd.f32 %v364_v32, %v362_v31 }
 0x1f2   : > { %367 = vst.msk [vmem:[%s1120_s14] sm:$0xff] %vm366_vm2, %v365_v33 }
 0x1f3   : > { %v371_v35 = vpop.xlane.xlu0 %370 }
 0x1f4   : > { %v372_v36 = vadd.f32 %v371_v35, %v368_v34 }
 0x1f6   : > { %373 = vst.msk [vmem:[%s1125_s23] sm:$0xff] %vm366_vm2, %v372_v36 }
 0x1f7 PF: > { %s1240_s1 = sld [smem:[#allocation12_spill]]  ;;  %p666_p7 = scmp.ge.s32.totalorder %s899_s22, 2 }
 0x1f8   : > { %s416_s29 = sand.u32 1, %s871_s15  }
 0x1f9   : > { %s417_s25 = scalar_lea.sflag [#allocation4], %s416_s29 }
 0x1fd   : > { %p1241_p8 = scmp.ne.s32.totalorder %s1240_s1, 0 }
 0x1ff   : > { %p660_p1 = pnand %p666_p7, %p1241_p8 }
 0x201   : > { %866 = dma.done.wait (!%p660_p1), %s417_s25, 128  }
 0x202   : > { %868 = vsyncadd (!%p660_p1), %s417_s25, 4294967168  ;;  %s22_s22 = sadd.s32 1, %s899_s22   ;;  %s1242_s18 = sld [smem:[#allocation11_spill]] }
 0x203   : > { %p19_p0 = scmp.ge.s32.totalorder %s22_s22, 10   ;;  %s1243_s14 = sld [smem:[#allocation13_spill]] }
 0x204   : > { %s1244_s15 = smov %s875_s16  ;;  %s1245_s16 = smov %s879_s17 }
 0x205   : > { %s1246_s17 = smov %s1067_s20  ;;  %s1247_s19 = smov %s895_s21 }
 0x206   : > { %s1249_s21 = smov %s1255_s13  ;;  %21 = sbr.rel (!%p19_p0) target bundleno = 10 (0xa), region = 105 }
 0x209   : > { %s1248_s20 = smov %s1243_s14 }
 0x20d   :  { %436 = vsyncpa [#allocation3], 1 }
 0x20e   :  { %438 = vsyncpa [#allocation3 + $0x1], 1 }
 0x20f   :  { %439 = vsyncpa [#allocation6], 1 }
 0x210   :  { %440 = vsyncpa [#allocation4], 1 }
 0x211   :  { %442 = vsyncpa [#allocation4 + $0x1], 1 }

</bundles_post_ra>
